<compile_context>
chip_gen: v5e
topology: v5e:2x2
jax: 0.10.0
libtpu: 0.0.40
codegen_flags: <defaults>
</compile_context>

<pallas_src>
import functools

import jax
import jax.numpy as jnp
from jax.experimental import pallas as pl
from jax.experimental.pallas import tpu as pltpu

_BN_EPS = 1e-3
_VMEM_LIMIT = 32 * 1024 * 1024


# ----------------------------------------------------------------------------- utils
def _round_up(a, b):
    return (a + b - 1) // b * b


def _make_divisible(v, divisor, min_value=None):
    if min_value is None:
        min_value = divisor
    new_v = max(min_value, int(v + divisor / 2) // divisor * divisor)
    if new_v < 0.9 * v:
        new_v += divisor
    return new_v


# ------------------------------------------------------------- fused matmul (1x1 conv)
def _matmul_bn_act_kernel(*refs, relu6, has_res):
    if has_res:
        x_ref, w_ref, scale_ref, bias_ref, res_ref, o_ref = refs
    else:
        x_ref, w_ref, scale_ref, bias_ref, o_ref = refs
        res_ref = None
    # bf16 x bf16 -> f32 accumulate on the MXU (single pass, no HIGHEST emulation).
    y = jnp.dot(x_ref[...], w_ref[...], preferred_element_type=jnp.float32)
    y = y * scale_ref[...] + bias_ref[...]
    if relu6:
        y = jnp.clip(y, 0.0, 6.0)
    if has_res:
        y = y + res_ref[...]
    o_ref[...] = y.astype(o_ref.dtype)


def matmul_bn_act(x, w, scale, bias, relu6, residual=None):
    """Fused (X @ W) * scale + bias [+ ReLU6] [+ residual], tiled over (M, N)."""
    M, K = x.shape
    Nc = w.shape[1]

    TM = min(512, _round_up(M, 8))
    Mp = _round_up(M, TM)
    TN = 128
    Np = _round_up(Nc, TN)

    xb = jnp.pad(x.astype(jnp.bfloat16), ((0, Mp - M), (0, 0)))
    wb = jnp.pad(w.astype(jnp.bfloat16), ((0, 0), (0, Np - Nc)))
    scale_p = jnp.pad(scale.reshape(1, Nc).astype(jnp.float32), ((0, 0), (0, Np - Nc)))
    bias_p = jnp.pad(bias.reshape(1, Nc).astype(jnp.float32), ((0, 0), (0, Np - Nc)))

    args = [xb, wb, scale_p, bias_p]
    in_specs = [
        pl.BlockSpec((TM, K), lambda i, j: (i, 0)),
        pl.BlockSpec((K, TN), lambda i, j: (0, j)),
        pl.BlockSpec((1, TN), lambda i, j: (0, j)),
        pl.BlockSpec((1, TN), lambda i, j: (0, j)),
    ]

    has_res = residual is not None
    if has_res:
        resp = jnp.pad(residual.astype(jnp.float32), ((0, Mp - M), (0, Np - Nc)))
        args.append(resp)
        in_specs.append(pl.BlockSpec((TM, TN), lambda i, j: (i, j)))

    kernel = functools.partial(_matmul_bn_act_kernel, relu6=relu6, has_res=has_res)
    flops = 2 * Mp * K * Np
    bytes_accessed = (Mp * K * 2 + K * Np * 2 + Mp * Np * 4
                      + (Mp * Np * 4 if has_res else 0))

    out = pl.pallas_call(
        kernel,
        out_shape=jax.ShapeDtypeStruct((Mp, Np), jnp.float32),
        grid=(Mp // TM, Np // TN),
        in_specs=in_specs,
        out_specs=pl.BlockSpec((TM, TN), lambda i, j: (i, j)),
        compiler_params=pltpu.CompilerParams(
            dimension_semantics=("parallel", "parallel"),
            vmem_limit_bytes=_VMEM_LIMIT),
        cost_estimate=pl.CostEstimate(flops=flops, transcendentals=0,
                                      bytes_accessed=bytes_accessed),
    )(*args)
    return out[:M, :Nc]


# ------------------------------------------------------------------- depthwise conv
def _dwconv_kernel(ph_ref, w_ref, scale_ref, bias_ref, o_ref, *, ksize, stride):
    # ph: (stride*stride, Hph, Wph, C) polyphase-decomposed padded input for one image
    # w:  (K*K, C)   scale/bias: (1, C)   o: (1, Ho, Wo, C)
    _, Ho, Wo, C = o_ref.shape
    ph = ph_ref[...]
    w = w_ref[...]          # hoisted: loaded once, indexed per tap
    scale = scale_ref[...]
    bias = bias_ref[...]
    acc = jnp.zeros(o_ref.shape, jnp.float32)
    for dy in range(ksize):
        qy, ry = dy // stride, dy % stride
        for dx in range(ksize):
            qx, rx = dx // stride, dx % stride
            p = ry * stride + rx
            tap = jax.lax.slice(ph, (p, qy, qx, 0), (p + 1, qy + Ho, qx + Wo, C))
            acc = acc + tap * w[dy * ksize + dx]
    y = acc * scale[0] + bias[0]
    o_ref[...] = jnp.clip(y, 0.0, 6.0)


def dwconv_bn_relu6(x, w_kkc, scale, bias, stride):
    """Depthwise KxK conv (pad=(K-1)//2, stride handled in-kernel) + folded BN + ReLU6.

    Striding is realized via a polyphase decomposition done once in XLA glue, so the
    kernel does exactly K*K*Ho*Wo*C MACs with only stride-1 slices (no wasted compute).
    """
    N, H, W, C = x.shape
    K = w_kkc.shape[0]
    s = stride
    pad = (K - 1) // 2
    Ho = (H + 2 * pad - K) // s + 1
    Wo = (W + 2 * pad - K) // s + 1
    Hp, Wp = H + 2 * pad, W + 2 * pad
    need_h = s * (Ho + (K - 1) // s)
    need_w = s * (Wo + (K - 1) // s)
    Hp2 = _round_up(max(Hp, need_h), s)
    Wp2 = _round_up(max(Wp, need_w), s)
    xp = jnp.pad(x, ((0, 0), (pad, Hp2 - H - pad), (pad, Wp2 - W - pad), (0, 0)))
    Hph, Wph = Hp2 // s, Wp2 // s

    # phases[n*s*s + ry*s + rx][i, j, c] == xp[n, s*i + ry, s*j + rx, c]
    ph = xp.reshape(N, Hph, s, Wph, s, C)
    ph = jnp.transpose(ph, (0, 2, 4, 1, 3, 5)).reshape(N * s * s, Hph, Wph, C)

    kernel = functools.partial(_dwconv_kernel, ksize=K, stride=s)
    return pl.pallas_call(
        kernel,
        out_shape=jax.ShapeDtypeStruct((N, Ho, Wo, C), jnp.float32),
        grid=(N,),
        in_specs=[
            pl.BlockSpec((s * s, Hph, Wph, C), lambda b: (b, 0, 0, 0)),
            pl.BlockSpec((K * K, C), lambda b: (0, 0)),
            pl.BlockSpec((1, C), lambda b: (0, 0)),
            pl.BlockSpec((1, C), lambda b: (0, 0)),
        ],
        out_specs=pl.BlockSpec((1, Ho, Wo, C), lambda b: (b, 0, 0, 0)),
        compiler_params=pltpu.CompilerParams(
            dimension_semantics=("parallel",),
            vmem_limit_bytes=_VMEM_LIMIT),
    )(ph, w_kkc.reshape(K * K, C), scale.reshape(1, C), bias.reshape(1, C))


# -------------------------------------------------------------------- global avg pool
def _gap_kernel(x_ref, o_ref, acc_ref, *, inv_hw):
    t = pl.program_id(0)

    @pl.when(t == 0)
    def _():
        acc_ref[...] = jnp.zeros_like(acc_ref)

    acc_ref[...] += jnp.sum(x_ref[...], axis=1)

    @pl.when(t == pl.num_programs(0) - 1)
    def _():
        o_ref[...] = acc_ref[...] * inv_hw


def global_avg_pool(x):
    """AdaptiveAvgPool2d(1) + flatten: (N,H,W,C) -> (N,C), tiled over H*W."""
    N, H, W, C = x.shape
    HW = H * W
    THW = min(512, _round_up(HW, 8))
    HWp = _round_up(HW, THW)
    xr = x.reshape(N, HW, C)
    if HWp != HW:
        xr = jnp.pad(xr, ((0, 0), (0, HWp - HW), (0, 0)))  # zero rows don't change sum
    kernel = functools.partial(_gap_kernel, inv_hw=1.0 / HW)
    return pl.pallas_call(
        kernel,
        out_shape=jax.ShapeDtypeStruct((N, C), jnp.float32),
        grid=(HWp // THW,),
        in_specs=[pl.BlockSpec((N, THW, C), lambda t: (0, t, 0))],
        out_specs=pl.BlockSpec((N, C), lambda t: (0, 0)),
        scratch_shapes=[pltpu.VMEM((N, C), jnp.float32)],
        compiler_params=pltpu.CompilerParams(
            dimension_semantics=("arbitrary",),
            vmem_limit_bytes=_VMEM_LIMIT),
    )(xr)


# --------------------------------------------------------------- conv glue (im2col)
def conv_bn_act(x_nhwc, w_hwio, scale, bias, stride, relu6, residual=None):
    """General conv (pad=(K-1)//2) via im2col (glue) + fused tiled Pallas matmul."""
    K = w_hwio.shape[0]
    cin, cout = w_hwio.shape[2], w_hwio.shape[3]
    N, H, W, C = x_nhwc.shape
    pad = (K - 1) // 2
    if K == 1 and stride == 1:
        cols = x_nhwc.reshape(N * H * W, C)
        Ho, Wo = H, W
    else:
        # TODO(synk): stem 3x3 still uses im2col; a tap-accumulation kernel would avoid
        #             materializing the 9x-inflated buffer (minor for cin=3 stem).
        xp = jnp.pad(x_nhwc, ((0, 0), (pad, pad), (pad, pad), (0, 0)))
        Ho = (H + 2 * pad - K) // stride + 1
        Wo = (W + 2 * pad - K) // stride + 1
        taps = []
        for dy in range(K):
            for dx in range(K):
                taps.append(jax.lax.slice(
                    xp,
                    (0, dy, dx, 0),
                    (N, dy + stride * (Ho - 1) + 1, dx + stride * (Wo - 1) + 1, C),
                    (1, stride, stride, 1)))
        cols = jnp.concatenate(taps, axis=-1).reshape(N * Ho * Wo, K * K * C)
    wmat = w_hwio.reshape(K * K * cin, cout)
    res2d = None
    if residual is not None:
        res2d = residual.reshape(N * Ho * Wo, cout)
    y = matmul_bn_act(cols, wmat, scale, bias, relu6, residual=res2d)
    return y.reshape(N, Ho, Wo, cout)


# ----------------------------------------------------------------------- parameters
def _init_conv(key, kh, kw, cin, cout):
    k1, k2, k3 = jax.random.split(key, 3)
    w = jax.random.normal(k1, (kh, kw, cin, cout), jnp.float32) * 0.05
    gamma = jax.random.uniform(k2, (cout,), jnp.float32, 0.5, 1.5)
    beta = jax.random.normal(k3, (cout,), jnp.float32) * 0.1
    # eval-mode BN with fresh running stats (mean=0, var=1) folded into scale/bias
    scale = gamma / jnp.sqrt(1.0 + _BN_EPS)
    bias = beta
    return dict(w=w, scale=scale, bias=bias)


def _init_dw(key, k, c):
    k1, k2, k3 = jax.random.split(key, 3)
    w = jax.random.normal(k1, (k, k, c), jnp.float32) * 0.05
    gamma = jax.random.uniform(k2, (c,), jnp.float32, 0.5, 1.5)
    beta = jax.random.normal(k3, (c,), jnp.float32) * 0.1
    return dict(w=w, scale=gamma / jnp.sqrt(1.0 + _BN_EPS), bias=beta)


def build_params(key, input_channel, last_channel, width_mult, round_nearest,
                 inverted_residual_setting):
    keys = jax.random.split(key, 64)
    ki = iter(range(64))
    input_channel = _make_divisible(input_channel * width_mult, round_nearest)
    last_channel = _make_divisible(last_channel * max(1.0, width_mult), round_nearest)

    params = {"stem": _init_conv(keys[next(ki)], 3, 3, 3, input_channel),
              "blocks": []}
    for t, c, n, s, ks, nl_c, nl_s, se_ratio in inverted_residual_setting:
        output_channel = _make_divisible(c * width_mult, round_nearest)
        for i in range(n):
            stride = s if i == 0 else 1
            hidden = int(t * input_channel)
            blk = {
                "expand": _init_conv(keys[next(ki)], 1, 1, input_channel, hidden),
                "dw": _init_dw(keys[next(ki)], ks[0], hidden),
                "project": _init_conv(keys[next(ki)], 1, 1, hidden, output_channel),
                "stride": stride,
                "use_res": (stride == 1 and input_channel == output_channel),
            }
            params["blocks"].append(blk)
            input_channel = output_channel
    params["head"] = _init_conv(keys[next(ki)], 1, 1, input_channel, last_channel)
    return params


# -------------------------------------------------------------------------- forward
def mobilenet_v2_forward(params, x_nchw):
    """Eval-mode forward: returns global_feat of shape (N, last_channel)."""
    x = jnp.transpose(x_nchw, (0, 2, 3, 1)).astype(jnp.float32)  # NCHW -> NHWC
    st = params["stem"]
    x = conv_bn_act(x, st["w"], st["scale"], st["bias"], stride=2, relu6=True)
    for blk in params["blocks"]:
        inp = x
        e, d, p = blk["expand"], blk["dw"], blk["project"]
        y = conv_bn_act(x, e["w"], e["scale"], e["bias"], stride=1, relu6=True)
        y = dwconv_bn_relu6(y, d["w"], d["scale"], d["bias"], stride=blk["stride"])
        res = inp if blk["use_res"] else None
        x = conv_bn_act(y, p["w"], p["scale"], p["bias"], stride=1, relu6=False,
                        residual=res)   # residual fused into the matmul epilogue
    hd = params["head"]
    x = conv_bn_act(x, hd["w"], hd["scale"], hd["bias"], stride=1, relu6=True)
    return global_avg_pool(x)  # AdaptiveAvgPool2d(1) + view(N, -1)


# ------------------------------------------------------------------- pure-JAX check
def _ref_conv(x, w, scale, bias, stride, relu6, groups=1):
    pad = (w.shape[0] - 1) // 2
    if groups == 1:
        # mirror the kernel's numerics: bf16 operands, f32 accumulation
        xc, wc = x.astype(jnp.bfloat16), w.astype(jnp.bfloat16)
    else:
        xc, wc = x, w  # depthwise path stays f32 (matches kernel)
    y = jax.lax.conv_general_dilated(
        xc, wc, (stride, stride), ((pad, pad), (pad, pad)),
        dimension_numbers=("NHWC", "HWIO", "NHWC"),
        feature_group_count=groups,
        preferred_element_type=jnp.float32)
    y = y * scale + bias
    return jnp.clip(y, 0.0, 6.0) if relu6 else y


def reference_forward(params, x_nchw):
    x = jnp.transpose(x_nchw, (0, 2, 3, 1)).astype(jnp.float32)
    st = params["stem"]
    x = _ref_conv(x, st["w"], st["scale"], st["bias"], 2, True)
    for blk in params["blocks"]:
        inp = x
        e, d, p = blk["expand"], blk["dw"], blk["project"]
        y = _ref_conv(x, e["w"], e["scale"], e["bias"], 1, True)
        c = d["w"].shape[-1]
        y = _ref_conv(y, d["w"].reshape(*d["w"].shape[:2], 1, c),
                      d["scale"], d["bias"], blk["stride"], True, groups=c)
        y = _ref_conv(y, p["w"], p["scale"], p["bias"], 1, False)
        if blk["use_res"]:
            y = y + inp
        x = y
    hd = params["head"]
    x = _ref_conv(x, hd["w"], hd["scale"], hd["bias"], 1, True)
    return jnp.mean(x, axis=(1, 2))


# ------------------------------------------------------------------------------ main
if __name__ == "__main__":
    key = jax.random.PRNGKey(0)
    kp, kx = jax.random.split(key)

    # small, deterministic config consistent with the module's constructor
    inverted_residual_setting = [
        # t, c, n, s, ks, nl_c, nl_s, se_ratio
        (1, 16, 1, 1, [3], 0, 0, None),
        (6, 24, 2, 2, [3], 0, 0, None),
    ]
    params = build_params(kp, input_channel=16, last_channel=64, width_mult=1.0,
                          round_nearest=8,
                          inverted_residual_setting=inverted_residual_setting)

    x = jax.random.normal(kx, (2, 3, 16, 16), jnp.float32)  # NCHW like PyTorch

    global_feat = mobilenet_v2_forward(params, x)
    global_feat = jax.block_until_ready(global_feat)
    assert global_feat.shape == (2, 64), global_feat.shape

    ref = jax.block_until_ready(reference_forward(params, x))
    assert jnp.allclose(global_feat, ref, rtol=1e-2, atol=1e-2), (
        float(jnp.max(jnp.abs(global_feat - ref))))

    print("KERNEL_OK")
</pallas_src>

<mosaic_0001>
module attributes {stable_mosaic.version = 11 : i64} {
  func.func @_matmul_bn_act_kernel(%arg0: i32, %arg1: i32, %arg2: memref<128x27xbf16, #tpu.memory_space<vmem>>, %arg3: memref<27x128xbf16, #tpu.memory_space<vmem>>, %arg4: memref<1x128xf32, #tpu.memory_space<vmem>>, %arg5: memref<1x128xf32, #tpu.memory_space<vmem>>, %arg6: memref<128x128xf32, #tpu.memory_space<vmem>>) attributes {dimension_semantics = [#tpu.dimension_semantics<parallel>, #tpu.dimension_semantics<parallel>], iteration_bounds = array<i64: 1, 1>, scalar_prefetch = 0 : i64, scratch_operands = 0 : i64, tpu.core_type = #tpu.core_type<tc>, window_params = [{transform_indices = @transform_0, window_bounds = array<i64: 128, 27>}, {transform_indices = @transform_1, window_bounds = array<i64: 27, 128>}, {transform_indices = @transform_2, window_bounds = array<i64: 1, 128>}, {transform_indices = @transform_3, window_bounds = array<i64: 1, 128>}, {transform_indices = @transform_4, window_bounds = array<i64: 128, 128>}]} {
    %c0 = arith.constant 0 : index
    %c0_0 = arith.constant 0 : index
    %0 = vector.load %arg2[%c0, %c0_0] : memref<128x27xbf16, #tpu.memory_space<vmem>>, vector<128x27xbf16>
    %c0_1 = arith.constant 0 : index
    %c0_2 = arith.constant 0 : index
    %1 = vector.load %arg3[%c0_1, %c0_2] : memref<27x128xbf16, #tpu.memory_space<vmem>>, vector<27x128xbf16>
    %cst = arith.constant dense<0.000000e+00> : vector<128x128xf32>
    %2 = tpu.matmul %0, %1, %cst {dimension_numbers = #tpu.dot_dimension_numbers<[1], [0], [0], [1], [0, 0, 1, 1], [], []>} : vector<128x27xbf16>, vector<27x128xbf16>, vector<128x128xf32> -> vector<128x128xf32>
    %c0_3 = arith.constant 0 : index
    %c0_4 = arith.constant 0 : index
    %3 = vector.load %arg4[%c0_3, %c0_4] : memref<1x128xf32, #tpu.memory_space<vmem>>, vector<1x128xf32>
    %4 = vector.broadcast %3 : vector<1x128xf32> to vector<128x128xf32>
    %5 = arith.mulf %2, %4 : vector<128x128xf32>
    %c0_5 = arith.constant 0 : index
    %c0_6 = arith.constant 0 : index
    %6 = vector.load %arg5[%c0_5, %c0_6] : memref<1x128xf32, #tpu.memory_space<vmem>>, vector<1x128xf32>
    %7 = vector.broadcast %6 : vector<1x128xf32> to vector<128x128xf32>
    %8 = arith.addf %5, %7 : vector<128x128xf32>
    %cst_7 = arith.constant 0.000000e+00 : f32
    %cst_8 = arith.constant 6.000000e+00 : f32
    %9 = vector.broadcast %cst_7 : f32 to vector<128x128xf32>
    %10 = arith.maximumf %9, %8 : vector<128x128xf32>
    %11 = vector.broadcast %cst_8 : f32 to vector<128x128xf32>
    %12 = arith.minimumf %11, %10 : vector<128x128xf32>
    %c0_9 = arith.constant 0 : index
    %c0_10 = arith.constant 0 : index
    %13 = vector.load %arg6[%c0_9, %c0_10] : memref<128x128xf32, #tpu.memory_space<vmem>>, vector<128x128xf32>
    tpu.vector_store %arg6[%c0_9, %c0_10], %12 {strides = array<i32>} : memref<128x128xf32, #tpu.memory_space<vmem>>, vector<128x128xf32>,
    return
  }
  func.func @transform_0(%arg0: i32, %arg1: i32) -> (i32, i32) {
    %c0_i32 = arith.constant 0 : i32
    %c0_i32_0 = arith.constant 0 : i32
    return %arg0, %c0_i32 : i32, i32
  }
  func.func @transform_1(%arg0: i32, %arg1: i32) -> (i32, i32) {
    %c0_i32 = arith.constant 0 : i32
    %c0_i32_0 = arith.constant 0 : i32
    return %c0_i32, %arg1 : i32, i32
  }
  func.func @transform_2(%arg0: i32, %arg1: i32) -> (i32, i32) {
    %c0_i32 = arith.constant 0 : i32
    %c0_i32_0 = arith.constant 0 : i32
    return %c0_i32, %arg1 : i32, i32
  }
  func.func @transform_3(%arg0: i32, %arg1: i32) -> (i32, i32) {
    %c0_i32 = arith.constant 0 : i32
    %c0_i32_0 = arith.constant 0 : i32
    return %c0_i32, %arg1 : i32, i32
  }
  func.func @transform_4(%arg0: i32, %arg1: i32) -> (i32, i32) {
    %c0_i32 = arith.constant 0 : i32
    return %arg0, %arg1 : i32, i32
  }
}

</mosaic_0001>

<bundles_post_ra>
// kernel: tpu_custom_call.1
= control target key start
LH: loop header
LB: loop body
LE: loop exit
PB: predicated region body
PF: predicated region fallthrough
CT: control target
= control target key end

     0   :  { %vm115_vm0 = vcmask 1044480   ;;  %vm116_vm1 = vcmask 1045504   ;;  %v373_v3 = vmov 65535   ;;  %s488_s0 = inlined_call_operand.vmem [shape: bf16[128,27], index: 0, kind: input, shape index: {}]   ;;  %s489_s1 = inlined_call_operand.vmem [shape: bf16[27,128], index: 1, kind: input, shape index: {}]   ;;  %s490_s2 = inlined_call_operand.vmem [shape: f32[1,128], index: 2, kind: input, shape index: {}]   ;;  %s491_s3 = inlined_call_operand.vmem [shape: f32[1,128], index: 3, kind: input, shape index: {}]   ;;  %s492_s4 = inlined_call_operand.hbm [shape: f32[128,128], index: 4, kind: output, shape index: {}]  }
   0x1   :  { %v315_v0 = vld [vmem:[%s489_s1 + $0x8] sm:$0xf]  ;;  %v334_v1 = vld [vmem:[%s489_s1 + $0x8] sm:$0x30]  ;;  %v117_v4 = vsel %vm115_vm0, 4294967295, %v373_v3 }
   0x2   :  { %v316_v2 = vor.u32 %v334_v1, %v315_v0  ;;  %v118_v5 = vsel %vm116_vm1, %v117_v4, 0 }
   0x4   :  { %v120_v6 = vand.u32 %v316_v2, %v118_v5 }
   0x5   :  { %9 = vsyncpa [#allocation3], 0  ;;  %v333_v7 = vld [vmem:[%s489_s1] sm:$0xff]  ;;  %v327_v9 = vld [vmem:[%s488_s0 + $0x10] sm:$0xff]  ;;  %vm90_vm2 = vcmask 220160   ;;  %s265_s15 = sshll.u32 %s492_s4, 4  ;;  %s266_s15 = int_to_ptr.hbm [resolvable:$true] %s265_s15 }
   0x6   :  { %128 = vmatpush.bf16.msra.mxu0 %v120_v6  ;;  %335 = vmatpush.bf16.msra.mxu1 %v120_v6  ;;  %v325_v8 = vld [vmem:[%s488_s0] sm:$0xff]  ;;  %v331_v11 = vld [vmem:[%s488_s0 + $0x30] sm:$0xff]  ;;  %v326_v12 = vld [vmem:[%s488_s0 + $0x8] sm:$0xff]  ;;  %s375_s16 = smov 128   ;;  %s376_s17 = smov 8  }
   0x7   :  { %336 = vmatpush.bf16.msra.mxu2 %v120_v6  ;;  %337 = vmatpush.bf16.msra.mxu3 %v120_v6  ;;  %v329_v10 = vld [vmem:[%s488_s0 + $0x20] sm:$0xff]  ;;  %v328_v13 = vld [vmem:[%s488_s0 + $0x18] sm:$0xff]  ;;  %v330_v14 = vld [vmem:[%s488_s0 + $0x28] sm:$0xff] }
   0x8   :  { %v332_v15 = vld [vmem:[%s488_s0 + $0x38] sm:$0xff]  ;;  %v446_v16 = vld [vmem:[%s490_s2] ss:$0 sm:$0xff]  ;;  %s374_s0 = smov [#allocation2]  }
   0x9   :  { %v451_v17 = vld [vmem:[%s491_s3] ss:$0 sm:$0xff]  ;;  %s263_s2 = sshll.u32 %s374_s0, 4  ;;  %s264_s2 = int_to_ptr.vmem [resolvable:$true] %s263_s2 }
   0xa   :  { %129 = vmatpush.bf16.msra.mxu0 %v333_v7  ;;  %338 = vmatpush.bf16.msra.mxu1 %v333_v7 }
   0xb   :  { %339 = vmatpush.bf16.msra.mxu2 %v333_v7  ;;  %340 = vmatpush.bf16.msra.mxu3 %v333_v7 }
   0xd   :  { %317 = vmatmul.msk.bf16.vlgmr.msra.gmra.mxu0 %vm90_vm2, %v325_v8  ;;  %319 = vmatmul.msk.bf16.vlgmr.msra.gmra.mxu1 %vm90_vm2, %v327_v9 }
   0xe   :  { %321 = vmatmul.msk.bf16.vlgmr.msra.gmra.mxu2 %vm90_vm2, %v329_v10  ;;  %323 = vmatmul.msk.bf16.vlgmr.msra.gmra.mxu3 %vm90_vm2, %v331_v11 }
  0x1d   :  { %318 = vmatmul.msk.bf16.gmra.mxu0 %vm90_vm2, %v326_v12  ;;  %320 = vmatmul.msk.bf16.gmra.mxu1 %vm90_vm2, %v328_v13 }
  0x1e   :  { %322 = vmatmul.msk.bf16.gmra.mxu2 %vm90_vm2, %v330_v14  ;;  %324 = vmatmul.msk.bf16.gmra.mxu3 %vm90_vm2, %v332_v15 }
  0x8a   :  { %v131_v18 = vpop.f32.mrf.mxu0  ;;  %v141_v19 = vpop.f32.mrf.mxu1 }
  0x8b   :  { %v175_v20 = vmul.f32 %v446_v16, %v131_v18  ;;  %v179_v21 = vmul.f32 %v446_v16, %v141_v19 }
  0x8d   :  { %v195_v22 = vadd.f32 %v451_v17, %v175_v20  ;;  %v199_v23 = vadd.f32 %v451_v17, %v179_v21 }
  0x8f   :  { %v211_v24 = vmax.f32 %v195_v22, 0.0  ;;  %v215_v25 = vmax.f32 %v199_v23, 0.0 }
  0x91   :  { %v227_v26 = vmin.f32 %v211_v24, 6.0  ;;  %v231_v27 = vmin.f32 %v215_v25, 6.0  ;;  %v151_v28 = vpop.f32.mrf.mxu2  ;;  %v161_v29 = vpop.f32.mrf.mxu3 }
  0x92   :  { %v183_v30 = vmul.f32 %v446_v16, %v151_v28  ;;  %v187_v31 = vmul.f32 %v446_v16, %v161_v29  ;;  %v133_v32 = vpop.f32.mrf.mxu0  ;;  %v143_v33 = vpop.f32.mrf.mxu1 }
  0x93   :  { %243 = vst [vmem:[#allocation2] sm:$0xff] %v227_v26  ;;  %v176_v34 = vmul.f32 %v446_v16, %v133_v32  ;;  %v180_v35 = vmul.f32 %v446_v16, %v143_v33 }
  0x94   :  { %247 = vst [vmem:[#allocation2 + $0x20] sm:$0xff] %v231_v27  ;;  %v203_v36 = vadd.f32 %v451_v17, %v183_v30  ;;  %v207_v37 = vadd.f32 %v451_v17, %v187_v31 }
  0x95   :  { %v196_v38 = vadd.f32 %v451_v17, %v176_v34  ;;  %v200_v39 = vadd.f32 %v451_v17, %v180_v35 }
  0x96   :  { %v219_v40 = vmax.f32 %v203_v36, 0.0  ;;  %v223_v41 = vmax.f32 %v207_v37, 0.0 }
  0x97   :  { %v212_v42 = vmax.f32 %v196_v38, 0.0  ;;  %v216_v43 = vmax.f32 %v200_v39, 0.0 }
  0x98   :  { %v235_v44 = vmin.f32 %v219_v40, 6.0  ;;  %v239_v45 = vmin.f32 %v223_v41, 6.0 }
  0x99   :  { %v228_v46 = vmin.f32 %v212_v42, 6.0  ;;  %v232_v47 = vmin.f32 %v216_v43, 6.0  ;;  %v153_v48 = vpop.f32.mrf.mxu2  ;;  %v163_v49 = vpop.f32.mrf.mxu3 }
  0x9a   :  { %251 = vst [vmem:[#allocation2 + $0x40] sm:$0xff] %v235_v44  ;;  %v184_v50 = vmul.f32 %v446_v16, %v153_v48  ;;  %v188_v51 = vmul.f32 %v446_v16, %v163_v49  ;;  %v136_v52 = vpop.f32.mrf.mxu0  ;;  %v146_v53 = vpop.f32.mrf.mxu1 }
  0x9b   :  { %255 = vst [vmem:[#allocation2 + $0x60] sm:$0xff] %v239_v45  ;;  %v177_v54 = vmul.f32 %v446_v16, %v136_v52  ;;  %v181_v55 = vmul.f32 %v446_v16, %v146_v53 }
  0x9c   :  { %244 = vst [vmem:[#allocation2 + $0x8] sm:$0xff] %v228_v46  ;;  %v204_v56 = vadd.f32 %v451_v17, %v184_v50  ;;  %v208_v57 = vadd.f32 %v451_v17, %v188_v51 }
  0x9d   :  { %248 = vst [vmem:[#allocation2 + $0x28] sm:$0xff] %v232_v47  ;;  %v197_v58 = vadd.f32 %v451_v17, %v177_v54  ;;  %v201_v59 = vadd.f32 %v451_v17, %v181_v55 }
  0x9e   :  { %v220_v60 = vmax.f32 %v204_v56, 0.0  ;;  %v224_v61 = vmax.f32 %v208_v57, 0.0 }
  0x9f   :  { %v213_v62 = vmax.f32 %v197_v58, 0.0  ;;  %v217_v63 = vmax.f32 %v201_v59, 0.0 }
  0xa0   :  { %v236_v0 = vmin.f32 %v220_v60, 6.0  ;;  %v240_v1 = vmin.f32 %v224_v61, 6.0 }
  0xa1   :  { %v229_v2 = vmin.f32 %v213_v62, 6.0  ;;  %v233_v3 = vmin.f32 %v217_v63, 6.0  ;;  %v156_v4 = vpop.f32.mrf.mxu2  ;;  %v166_v5 = vpop.f32.mrf.mxu3 }
  0xa2   :  { %252 = vst [vmem:[#allocation2 + $0x48] sm:$0xff] %v236_v0  ;;  %v185_v6 = vmul.f32 %v446_v16, %v156_v4  ;;  %v189_v7 = vmul.f32 %v446_v16, %v166_v5  ;;  %v138_v8 = vpop.f32.mrf.mxu0  ;;  %v148_v9 = vpop.f32.mrf.mxu1 }
  0xa3   :  { %256 = vst [vmem:[#allocation2 + $0x68] sm:$0xff] %v240_v1  ;;  %v178_v10 = vmul.f32 %v446_v16, %v138_v8  ;;  %v182_v11 = vmul.f32 %v446_v16, %v148_v9 }
  0xa4   :  { %245 = vst [vmem:[#allocation2 + $0x10] sm:$0xff] %v229_v2  ;;  %v205_v12 = vadd.f32 %v451_v17, %v185_v6  ;;  %v209_v13 = vadd.f32 %v451_v17, %v189_v7 }
  0xa5   :  { %249 = vst [vmem:[#allocation2 + $0x30] sm:$0xff] %v233_v3  ;;  %v198_v14 = vadd.f32 %v451_v17, %v178_v10  ;;  %v202_v15 = vadd.f32 %v451_v17, %v182_v11 }
  0xa6   :  { %v221_v18 = vmax.f32 %v205_v12, 0.0  ;;  %v225_v19 = vmax.f32 %v209_v13, 0.0 }
  0xa7   :  { %v214_v20 = vmax.f32 %v198_v14, 0.0  ;;  %v218_v21 = vmax.f32 %v202_v15, 0.0 }
  0xa8   :  { %v237_v22 = vmin.f32 %v221_v18, 6.0  ;;  %v241_v23 = vmin.f32 %v225_v19, 6.0 }
  0xa9   :  { %v230_v24 = vmin.f32 %v214_v20, 6.0  ;;  %v234_v25 = vmin.f32 %v218_v21, 6.0  ;;  %v158_v26 = vpop.f32.mrf.mxu2  ;;  %v168_v27 = vpop.f32.mrf.mxu3 }
  0xaa   :  { %253 = vst [vmem:[#allocation2 + $0x50] sm:$0xff] %v237_v22  ;;  %v186_v28 = vmul.f32 %v446_v16, %v158_v26  ;;  %v190_v29 = vmul.f32 %v446_v16, %v168_v27 }
  0xab   :  { %257 = vst [vmem:[#allocation2 + $0x70] sm:$0xff] %v241_v23 }
  0xac   :  { %246 = vst [vmem:[#allocation2 + $0x18] sm:$0xff] %v230_v24  ;;  %v206_v30 = vadd.f32 %v451_v17, %v186_v28  ;;  %v210_v31 = vadd.f32 %v451_v17, %v190_v29 }
  0xad   :  { %250 = vst [vmem:[#allocation2 + $0x38] sm:$0xff] %v234_v25 }
  0xae   :  { %v222_v32 = vmax.f32 %v206_v30, 0.0  ;;  %v226_v33 = vmax.f32 %v210_v31, 0.0 }
  0xb0   :  { %v238_v34 = vmin.f32 %v222_v32, 6.0  ;;  %v242_v35 = vmin.f32 %v226_v33, 6.0 }
  0xb2   :  { %254 = vst [vmem:[#allocation2 + $0x58] sm:$0xff] %v238_v34 }
  0xb3   :  { %258 = vst [vmem:[#allocation2 + $0x78] sm:$0xff] %v242_v35 }
  0xb4   :  { %271 = dma.vmem_to_hbm [thread:$0]  %s264_s2, 2048, %s266_s15, [#allocation3], %s375_s16, %s375_s16, %s376_s17  }
  0xb5   :  { %371 = dma.done.wait [#allocation3], 2048  }
  0xb6   :  { %372 = vsyncadd [#allocation3], 4294965248 }
  0xb7   :  { %276 = vsyncpa [#allocation3], 1 }

</bundles_post_ra>
